<compile_context>
chip_gen: v7x
topology: tpu7x:2x2x1
jax: 0.10.0
libtpu: 0.0.40
codegen_flags: <defaults>
</compile_context>

<pallas_src>
import functools
import math

import jax
import jax.numpy as jnp
from jax.experimental import pallas as pl
from jax.experimental.pallas import tpu as pltpu


# ----------------------------------------------------------------------------
# tiling helper
# ----------------------------------------------------------------------------
def _tile(dim, desired, align):
    """Largest multiple of `align` that divides `dim` and is <= `desired`.
    Falls back to the full dim (block == full array dim is always legal)."""
    if dim <= desired:
        return dim
    t = (desired // align) * align
    while t >= align:
        if dim % t == 0:
            return t
        t -= align
    return dim


# ----------------------------------------------------------------------------
# Tiled dense matmul with fused epilogues (bias / bias+GELU / bias+residual+LN)
# ----------------------------------------------------------------------------
def _dense_kernel(*refs, mode, eps):
    if mode == "res_ln":
        x_ref, w_ref, b_ref, res_ref, g_ref, bt_ref, o_ref, acc_ref = refs
    else:
        x_ref, w_ref, b_ref, o_ref, acc_ref = refs

    kk = pl.program_id(2)

    @pl.when(kk == 0)
    def _():
        acc_ref[...] = jnp.zeros_like(acc_ref)

    acc_ref[...] += jnp.dot(x_ref[...], w_ref[...],
                            preferred_element_type=jnp.float32)

    @pl.when(kk == pl.num_programs(2) - 1)
    def _():
        y = acc_ref[...] + b_ref[...].astype(jnp.float32)
        if mode == "gelu":
            y = jax.nn.gelu(y, approximate=False)
        elif mode == "res_ln":
            y = y + res_ref[...].astype(jnp.float32)
            mean = jnp.mean(y, axis=-1, keepdims=True)
            var = jnp.mean(jnp.square(y - mean), axis=-1, keepdims=True)
            y = (y - mean) * jax.lax.rsqrt(var + eps)
            y = (y * g_ref[...].astype(jnp.float32)
                 + bt_ref[...].astype(jnp.float32))
        o_ref[...] = y.astype(o_ref.dtype)


def dense(x, w, b, *, mode="plain", residual=None, gamma=None, beta=None,
          out_dtype=jnp.bfloat16, eps=1e-12, tm_d=256, tn_d=512, tk_d=512):
    """y = epilogue(x @ w + b).  mode: "plain" | "gelu" | "res_ln"."""
    M, K = x.shape
    Kw, N = w.shape
    assert K == Kw
    tm = _tile(M, tm_d, 8)
    tk = _tile(K, tk_d, 128)
    # LayerNorm epilogue needs the full hidden row resident in one tile.
    tn = N if mode == "res_ln" else _tile(N, tn_d, 128)
    grid = (M // tm, N // tn, K // tk)

    in_specs = [
        pl.BlockSpec((tm, tk), lambda i, j, k: (i, k)),
        pl.BlockSpec((tk, tn), lambda i, j, k: (k, j)),
        pl.BlockSpec((1, tn), lambda i, j, k: (0, j)),
    ]
    args = [x, w, b.reshape(1, N)]
    if mode == "res_ln":
        in_specs += [
            pl.BlockSpec((tm, tn), lambda i, j, k: (i, j)),
            pl.BlockSpec((1, tn), lambda i, j, k: (0, j)),
            pl.BlockSpec((1, tn), lambda i, j, k: (0, j)),
        ]
        args += [residual, gamma.reshape(1, N), beta.reshape(1, N)]

    return pl.pallas_call(
        functools.partial(_dense_kernel, mode=mode, eps=eps),
        out_shape=jax.ShapeDtypeStruct((M, N), out_dtype),
        grid_spec=pltpu.PrefetchScalarGridSpec(
            num_scalar_prefetch=0,
            grid=grid,
            in_specs=in_specs,
            out_specs=pl.BlockSpec((tm, tn), lambda i, j, k: (i, j)),
            scratch_shapes=[pltpu.VMEM((tm, tn), jnp.float32)],
        ),
        compiler_params=pltpu.CompilerParams(
            dimension_semantics=("parallel", "parallel", "arbitrary")),
    )(*args)


# ----------------------------------------------------------------------------
# Fused Q/K/V projection: x is read from HBM once, three matmuls per tile.
# ----------------------------------------------------------------------------
def _qkv_kernel(x_ref, wq_ref, wk_ref, wv_ref, bq_ref, bk_ref, bv_ref,
                q_ref, k_ref, v_ref, accq, acck, accv):
    kk = pl.program_id(2)

    @pl.when(kk == 0)
    def _():
        accq[...] = jnp.zeros_like(accq)
        acck[...] = jnp.zeros_like(acck)
        accv[...] = jnp.zeros_like(accv)

    x = x_ref[...]
    accq[...] += jnp.dot(x, wq_ref[...], preferred_element_type=jnp.float32)
    acck[...] += jnp.dot(x, wk_ref[...], preferred_element_type=jnp.float32)
    accv[...] += jnp.dot(x, wv_ref[...], preferred_element_type=jnp.float32)

    @pl.when(kk == pl.num_programs(2) - 1)
    def _():
        q_ref[...] = (accq[...] + bq_ref[...].astype(jnp.float32)).astype(q_ref.dtype)
        k_ref[...] = (acck[...] + bk_ref[...].astype(jnp.float32)).astype(k_ref.dtype)
        v_ref[...] = (accv[...] + bv_ref[...].astype(jnp.float32)).astype(v_ref.dtype)


def qkv_dense(x, wq, wk, wv, bq, bk, bv, *, out_dtype=jnp.bfloat16,
              tm_d=256, tn_d=256, tk_d=512):
    M, K = x.shape
    _, N = wq.shape
    tm = _tile(M, tm_d, 8)
    tn = _tile(N, tn_d, 128)
    tk = _tile(K, tk_d, 128)
    grid = (M // tm, N // tn, K // tk)

    w_spec = pl.BlockSpec((tk, tn), lambda i, j, k: (k, j))
    b_spec = pl.BlockSpec((1, tn), lambda i, j, k: (0, j))
    o_spec = pl.BlockSpec((tm, tn), lambda i, j, k: (i, j))
    out_sd = jax.ShapeDtypeStruct((M, N), out_dtype)

    return pl.pallas_call(
        _qkv_kernel,
        out_shape=(out_sd, out_sd, out_sd),
        grid_spec=pltpu.PrefetchScalarGridSpec(
            num_scalar_prefetch=0,
            grid=grid,
            in_specs=[pl.BlockSpec((tm, tk), lambda i, j, k: (i, k)),
                      w_spec, w_spec, w_spec, b_spec, b_spec, b_spec],
            out_specs=[o_spec, o_spec, o_spec],
            scratch_shapes=[pltpu.VMEM((tm, tn), jnp.float32)] * 3,
        ),
        compiler_params=pltpu.CompilerParams(
            dimension_semantics=("parallel", "parallel", "arbitrary")),
    )(x, wq, wk, wv, bq.reshape(1, N), bk.reshape(1, N), bv.reshape(1, N))


# ----------------------------------------------------------------------------
# Row-tiled LayerNorm (embedding LN; no fake zero-residual input).
# ----------------------------------------------------------------------------
def _layernorm_kernel(x_ref, g_ref, b_ref, o_ref, *, eps):
    x = x_ref[...].astype(jnp.float32)
    mean = jnp.mean(x, axis=-1, keepdims=True)
    var = jnp.mean(jnp.square(x - mean), axis=-1, keepdims=True)
    y = (x - mean) * jax.lax.rsqrt(var + eps)
    o_ref[...] = (y * g_ref[...].astype(jnp.float32)
                  + b_ref[...].astype(jnp.float32)).astype(o_ref.dtype)


def layernorm(x, gamma, beta, *, out_dtype=jnp.bfloat16, eps=1e-12, tm_d=512):
    M, H = x.shape
    tm = _tile(M, tm_d, 8)
    return pl.pallas_call(
        functools.partial(_layernorm_kernel, eps=eps),
        out_shape=jax.ShapeDtypeStruct((M, H), out_dtype),
        grid=(M // tm,),
        in_specs=[
            pl.BlockSpec((tm, H), lambda i: (i, 0)),
            pl.BlockSpec((1, H), lambda i: (0, 0)),
            pl.BlockSpec((1, H), lambda i: (0, 0)),
        ],
        out_specs=pl.BlockSpec((tm, H), lambda i: (i, 0)),
        compiler_params=pltpu.CompilerParams(dimension_semantics=("parallel",)),
    )(x, gamma.reshape(1, H), beta.reshape(1, H))


# ----------------------------------------------------------------------------
# Flash-style masked multi-head self-attention.
#   grid = (B, Sq//tq, Skv//tkv); kv axis is the "arbitrary" reduction axis.
#   Heads are split by static lane-slices inside the kernel (no host-side
#   split-head transposes), and the output is written as a lane-dense
#   (B, S, H) slab (head-merge happens in the epilogue).
# ----------------------------------------------------------------------------
def _flash_attn_kernel(q_ref, k_ref, v_ref, bias_ref, o_ref,
                       m_ref, l_ref, acc_ref, *, n_heads, d_head, scale):
    ki = pl.program_id(2)

    @pl.when(ki == 0)
    def _():
        m_ref[...] = jnp.full_like(m_ref, -jnp.inf)
        l_ref[...] = jnp.zeros_like(l_ref)
        acc_ref[...] = jnp.zeros_like(acc_ref)

    q = q_ref[0]        # (tq,  H)  bf16
    k = k_ref[0]        # (tkv, H)  bf16
    v = v_ref[0]        # (tkv, H)  bf16
    bias = bias_ref[0]  # (1, tkv)  f32  additive key mask

    for h in range(n_heads):
        sl = slice(h * d_head, (h + 1) * d_head)
        s = jnp.dot(q[:, sl], k[:, sl].T,
                    preferred_element_type=jnp.float32) * scale + bias
        m_prev = m_ref[h]                                        # (tq, 1)
        m_new = jnp.maximum(m_prev, jnp.max(s, axis=-1, keepdims=True))
        alpha = jnp.exp(m_prev - m_new)
        p = jnp.exp(s - m_new)                                   # (tq, tkv)
        l_ref[h] = alpha * l_ref[h] + jnp.sum(p, axis=-1, keepdims=True)
        acc_ref[h] = alpha * acc_ref[h] + jnp.dot(
            p.astype(v.dtype), v[:, sl], preferred_element_type=jnp.float32)
        m_ref[h] = m_new

    @pl.when(ki == pl.num_programs(2) - 1)
    def _():
        outs = [acc_ref[h] * pl.reciprocal(l_ref[h], approx=True)
                for h in range(n_heads)]
        o_ref[0] = jnp.concatenate(outs, axis=-1).astype(o_ref.dtype)


def attention(q, k, v, mask_bias, *, n_heads, tq_d=256, tkv_d=256):
    """q/k/v: (B, S, H) bf16;  mask_bias: (B, 1, S) f32  ->  (B, S, H) bf16."""
    B, S, H = q.shape
    d_head = H // n_heads
    scale = 1.0 / math.sqrt(d_head)
    tq = _tile(S, tq_d, 8)
    tkv = _tile(S, tkv_d, 128)
    grid = (B, S // tq, S // tkv)

    kern = functools.partial(_flash_attn_kernel, n_heads=n_heads,
                             d_head=d_head, scale=scale)
    return pl.pallas_call(
        kern,
        out_shape=jax.ShapeDtypeStruct((B, S, H), jnp.bfloat16),
        grid_spec=pltpu.PrefetchScalarGridSpec(
            num_scalar_prefetch=0,
            grid=grid,
            in_specs=[
                pl.BlockSpec((1, tq, H), lambda b, qi, ki: (b, qi, 0)),
                pl.BlockSpec((1, tkv, H), lambda b, qi, ki: (b, ki, 0)),
                pl.BlockSpec((1, tkv, H), lambda b, qi, ki: (b, ki, 0)),
                pl.BlockSpec((1, 1, tkv), lambda b, qi, ki: (b, 0, ki)),
            ],
            out_specs=pl.BlockSpec((1, tq, H), lambda b, qi, ki: (b, qi, 0)),
            scratch_shapes=[
                pltpu.VMEM((n_heads, tq, 1), jnp.float32),       # running max
                pltpu.VMEM((n_heads, tq, 1), jnp.float32),       # running sum
                pltpu.VMEM((n_heads, tq, d_head), jnp.float32),  # output acc
            ],
        ),
        compiler_params=pltpu.CompilerParams(
            dimension_semantics=("parallel", "parallel", "arbitrary")),
    )(q, k, v, mask_bias)


# ----------------------------------------------------------------------------
# PLM: parameter init + forward (split_document=False path)
# ----------------------------------------------------------------------------
def init_plm_params(key, *, vocab, max_pos, hidden, n_layers, n_heads,
                    intermediate, dtype=jnp.bfloat16):
    def nrm(k, shape, std=0.02):
        return (std * jax.random.normal(k, shape, jnp.float32)).astype(dtype)

    keys = iter(jax.random.split(key, 8 + 16 * n_layers))
    params = dict(
        word_emb=nrm(next(keys), (vocab, hidden)),
        pos_emb=nrm(next(keys), (max_pos, hidden)),
        type_emb=nrm(next(keys), (2, hidden)),
        emb_ln_g=jnp.ones((hidden,), jnp.float32),
        emb_ln_b=jnp.zeros((hidden,), jnp.float32),
        layers=[],
    )
    zeros_h = jnp.zeros((hidden,), dtype)
    for _ in range(n_layers):
        lyr = dict(
            wq=nrm(next(keys), (hidden, hidden)), bq=zeros_h,
            wk=nrm(next(keys), (hidden, hidden)), bk=zeros_h,
            wv=nrm(next(keys), (hidden, hidden)), bv=zeros_h,
            wo=nrm(next(keys), (hidden, hidden)), bo=zeros_h,
            ln1_g=jnp.ones((hidden,), jnp.float32),
            ln1_b=jnp.zeros((hidden,), jnp.float32),
            w1=nrm(next(keys), (hidden, intermediate)),
            b1=jnp.zeros((intermediate,), dtype),
            w2=nrm(next(keys), (intermediate, hidden)), b2=zeros_h,
            ln2_g=jnp.ones((hidden,), jnp.float32),
            ln2_b=jnp.zeros((hidden,), jnp.float32),
        )
        params["layers"].append(lyr)
    params["n_heads"] = n_heads
    return params


def plm_forward(params, subwords, sentences, sentence_masks,
                sentence_global_masks, mask, global_mask=None):
    """Equivalent of PLM.forward with split_document=False: last_hidden_state."""
    # TODO(synk): split_document=True path (ragged per-sentence re-encode +
    # pad_sequence) is not implemented; this mirrors split_document=False.
    del sentences, sentence_masks, sentence_global_masks, global_mask
    B, S = subwords.shape
    H = params["word_emb"].shape[1]
    nH = params["n_heads"]

    # Embedding gather + sum is glue in plain JAX; LayerNorm runs in-kernel.
    pos_ids = jnp.arange(S)
    emb = (params["word_emb"][subwords].astype(jnp.float32)
           + params["pos_emb"][pos_ids][None, :, :].astype(jnp.float32)
           + params["type_emb"][0][None, None, :].astype(jnp.float32))
    x = layernorm(emb.reshape(B * S, H), params["emb_ln_g"], params["emb_ln_b"],
                  out_dtype=jnp.bfloat16)

    # Additive key mask, (B, 1, S) so the kernel gets a lane-dense row.
    mask_bias = ((1.0 - mask.astype(jnp.float32)) * -1e9).reshape(B, 1, S)

    n_layers = len(params["layers"])
    for li, lyr in enumerate(params["layers"]):
        # Fused Q/K/V projection (single pass over x).
        q, k, v = qkv_dense(x, lyr["wq"], lyr["wk"], lyr["wv"],
                            lyr["bq"], lyr["bk"], lyr["bv"])
        # Flash attention, lane-dense (B, S, H) output (no head transposes).
        ctx = attention(q.reshape(B, S, H), k.reshape(B, S, H),
                        v.reshape(B, S, H), mask_bias, n_heads=nH)
        ctx = ctx.reshape(B * S, H)
        # Output projection with fused residual-add + LayerNorm epilogue.
        x = dense(ctx, lyr["wo"], lyr["bo"], mode="res_ln",
                  residual=x, gamma=lyr["ln1_g"], beta=lyr["ln1_b"],
                  out_dtype=jnp.bfloat16)
        # FFN: up-proj with fused bias+GELU, down-proj with fused residual+LN.
        h = dense(x, lyr["w1"], lyr["b1"], mode="gelu", out_dtype=jnp.bfloat16)
        last = li == n_layers - 1
        x = dense(h, lyr["w2"], lyr["b2"], mode="res_ln",
                  residual=x, gamma=lyr["ln2_g"], beta=lyr["ln2_b"],
                  out_dtype=jnp.float32 if last else jnp.bfloat16)

    return x.reshape(B, S, H)   # last_hidden_state


# ----------------------------------------------------------------------------
if __name__ == "__main__":
    B, S = 2, 16
    VOCAB, MAX_POS, H, N_LAYERS, N_HEADS, INTER = 100, 64, 32, 2, 4, 64

    key = jax.random.PRNGKey(0)
    k_param, k_ids = jax.random.split(key)

    params = init_plm_params(k_param, vocab=VOCAB, max_pos=MAX_POS, hidden=H,
                             n_layers=N_LAYERS, n_heads=N_HEADS,
                             intermediate=INTER)

    subwords = jax.random.randint(k_ids, (B, S), 0, VOCAB, dtype=jnp.int32)
    # attention mask: second sequence has 4 padded positions
    mask = jnp.ones((B, S), jnp.int32).at[1, S - 4:].set(0)

    out = plm_forward(params, subwords,
                      sentences=[], sentence_masks=[],
                      sentence_global_masks=[],
                      mask=mask, global_mask=None)
    out = jax.block_until_ready(out)

    assert out.shape == (B, S, H) and out.dtype == jnp.float32
    assert bool(jnp.all(jnp.isfinite(out)))
    print("KERNEL_OK")
</pallas_src>

<mosaic_0001>
module attributes {stable_mosaic.version = 11 : i64} {
  func.func @_layernorm_kernel(%arg0: i32, %arg1: memref<32x32xf32, #tpu.memory_space<vmem>>, %arg2: memref<1x32xf32, #tpu.memory_space<vmem>>, %arg3: memref<1x32xf32, #tpu.memory_space<vmem>>, %arg4: memref<32x32xbf16, #tpu.memory_space<vmem>>) attributes {dimension_semantics = [#tpu.dimension_semantics<parallel>], iteration_bounds = array<i64: 1>, scalar_prefetch = 0 : i64, scratch_operands = 0 : i64, tpu.core_type = #tpu.core_type<tc>, window_params = [{transform_indices = @transform_0, window_bounds = array<i64: 32, 32>}, {pipeline_mode = #tpu.pipeline_mode<synchronous>, transform_indices = @transform_1, window_bounds = array<i64: 1, 32>}, {pipeline_mode = #tpu.pipeline_mode<synchronous>, transform_indices = @transform_2, window_bounds = array<i64: 1, 32>}, {transform_indices = @transform_3, window_bounds = array<i64: 32, 32>}]} {
    %c0 = arith.constant 0 : index
    %c0_0 = arith.constant 0 : index
    %0 = vector.load %arg1[%c0, %c0_0] : memref<32x32xf32, #tpu.memory_space<vmem>>, vector<32x32xf32>
    %cst = arith.constant dense<0.000000e+00> : vector<32xf32>
    %1 = vector.multi_reduction <add>, %0, %cst [1] : vector<32x32xf32> to vector<32xf32>
    %2 = vector.shape_cast %1 : vector<32xf32> to vector<32x1xf32>
    %cst_1 = arith.constant 3.200000e+01 : f32
    %3 = vector.broadcast %cst_1 : f32 to vector<32x1xf32>
    %4 = arith.divf %2, %3 : vector<32x1xf32>
    %5 = vector.broadcast %4 : vector<32x1xf32> to vector<32x32xf32>
    %6 = arith.subf %0, %5 : vector<32x32xf32>
    %7 = arith.mulf %6, %6 : vector<32x32xf32>
    %cst_2 = arith.constant dense<0.000000e+00> : vector<32xf32>
    %8 = vector.multi_reduction <add>, %7, %cst_2 [1] : vector<32x32xf32> to vector<32xf32>
    %9 = vector.shape_cast %8 : vector<32xf32> to vector<32x1xf32>
    %cst_3 = arith.constant 3.200000e+01 : f32
    %10 = vector.broadcast %cst_3 : f32 to vector<32x1xf32>
    %11 = arith.divf %9, %10 : vector<32x1xf32>
    %12 = vector.broadcast %4 : vector<32x1xf32> to vector<32x32xf32>
    %13 = arith.subf %0, %12 : vector<32x32xf32>
    %cst_4 = arith.constant 9.99999996E-13 : f32
    %14 = vector.broadcast %cst_4 : f32 to vector<32x1xf32>
    %15 = arith.addf %11, %14 : vector<32x1xf32>
    %16 = math.rsqrt %15 : vector<32x1xf32>
    %17 = vector.broadcast %16 : vector<32x1xf32> to vector<32x32xf32>
    %18 = arith.mulf %13, %17 : vector<32x32xf32>
    %c0_5 = arith.constant 0 : index
    %c0_6 = arith.constant 0 : index
    %19 = vector.load %arg2[%c0_5, %c0_6] : memref<1x32xf32, #tpu.memory_space<vmem>>, vector<1x32xf32>
    %20 = vector.broadcast %19 : vector<1x32xf32> to vector<32x32xf32>
    %21 = arith.mulf %18, %20 : vector<32x32xf32>
    %c0_7 = arith.constant 0 : index
    %c0_8 = arith.constant 0 : index
    %22 = vector.load %arg3[%c0_7, %c0_8] : memref<1x32xf32, #tpu.memory_space<vmem>>, vector<1x32xf32>
    %23 = vector.broadcast %22 : vector<1x32xf32> to vector<32x32xf32>
    %24 = arith.addf %21, %23 : vector<32x32xf32>
    %25 = arith.truncf %24 : vector<32x32xf32> to vector<32x32xbf16>
    %c0_9 = arith.constant 0 : index
    %c0_10 = arith.constant 0 : index
    %26 = vector.load %arg4[%c0_9, %c0_10] : memref<32x32xbf16, #tpu.memory_space<vmem>>, vector<32x32xbf16>
    tpu.vector_store %arg4[%c0_9, %c0_10], %25 {strides = array<i32>} : memref<32x32xbf16, #tpu.memory_space<vmem>>, vector<32x32xbf16>,
    return
  }
  func.func @transform_0(%arg0: i32) -> (i32, i32) {
    %c0_i32 = arith.constant 0 : i32
    %c0_i32_0 = arith.constant 0 : i32
    return %arg0, %c0_i32 : i32, i32
  }
  func.func @transform_1(%arg0: i32) -> (i32, i32) {
    %c0_i32 = arith.constant 0 : i32
    %c0_i32_0 = arith.constant 0 : i32
    %c0_i32_1 = arith.constant 0 : i32
    return %c0_i32, %c0_i32_0 : i32, i32
  }
  func.func @transform_2(%arg0: i32) -> (i32, i32) {
    %c0_i32 = arith.constant 0 : i32
    %c0_i32_0 = arith.constant 0 : i32
    %c0_i32_1 = arith.constant 0 : i32
    return %c0_i32, %c0_i32_0 : i32, i32
  }
  func.func @transform_3(%arg0: i32) -> (i32, i32) {
    %c0_i32 = arith.constant 0 : i32
    %c0_i32_0 = arith.constant 0 : i32
    return %arg0, %c0_i32 : i32, i32
  }
}

</mosaic_0001>

<bundles_post_ra>
// kernel: tpu_custom_call.1
= control target key start
LH: loop header
LB: loop body
LE: loop exit
PB: predicated region body
PF: predicated region fallthrough
CT: control target
= control target key end

     0   :  { %8 = vsyncpa [#allocation3], 0  ;;  %s287_s0 = inlined_call_operand.hbm [shape: f32[32,32], index: 0, kind: input, shape index: {}]   ;;  %s288_s1 = inlined_call_operand.vmem [shape: f32[1,32], index: 1, kind: input, shape index: {}]   ;;  %s289_s2 = inlined_call_operand.vmem [shape: f32[1,32], index: 2, kind: input, shape index: {}]   ;;  %s290_s3 = inlined_call_operand.hbm [shape: bf16[32,32], index: 3, kind: output, shape index: {}]  }
   0x1   :  { %9 = vsyncpa [#allocation4], 0  ;;  %s219_s12 = smov [#allocation2]   ;;  %s171_s16 = scalar_lea.hbm %s287_s0, 512 }
   0x2   :  { %s15_s13 = sshll.u32 %s219_s12, 4  ;;  %p172_p0 = scmp.ne.s32.totalorder %s287_s0, %s171_s16  ;;  %s16_s13 = int_to_ptr.vmem [resolvable:$true] %s15_s13 }
   0x3   :  { %p175_p1 = scmp.lt.u32.totalorder %s171_s16, %s287_s0 }
   0x5   :  { %p177_p2 = pnand %p175_p1, %p172_p0 }
   0x7   :  { %180 = shalt.err (!%p177_p2)
}
   0x8   :  { %s181_s21 = scalar_lea.vmem %s16_s13, 512  ;;  %p186_p4 = scmp.lt.s32.totalorder %s16_s13, %s16_s13 }
   0x9   :  { %p182_p3 = scmp.ne.s32.totalorder %s16_s13, %s181_s21  ;;  %p187_p5 = scmp.lt.s32.totalorder %s181_s21, %s181_s21 }
   0xb   :  { %p188_p6 = por %p187_p5, %p186_p4 }
   0xd   :  { %p189_p7 = pnand %p188_p6, %p182_p3 }
   0xf   :  { %192 = shalt.err (!%p189_p7)
}
  0x10   :  { %s220_s22 = smov 128   ;;  %s221_s23 = smov 8  }
  0x11   :  { %21 = dma.hbm_to_vmem [thread:$0]  %s287_s0, 512, %s16_s13, [#allocation3], %s220_s22, %s220_s22, %s221_s23  }
  0x12   :  { %215 = dma.done.wait [#allocation3], 512  }
  0x13   :  { %216 = vsyncadd [#allocation3], 4294966784  ;;  %vm33_vm0 = vcmask 261120   ;;  %v29_v0 = vld [vmem:[#allocation2] sm:$0xff]  ;;  %v31_v1 = vld [vmem:[#allocation2 + $0x10] sm:$0xff]  ;;  %vm125_vm1 = vcmask 257024  }
  0x14   :  { %v30_v2 = vld [vmem:[#allocation2 + $0x8] sm:$0xff]  ;;  %v34_v3 = vsel %vm33_vm0, %v29_v0, 0.0  ;;  %v40_v4 = vsel %vm33_vm0, %v31_v1, 0.0  ;;  %v32_v5 = vld [vmem:[#allocation2 + $0x18] sm:$0xff]  ;;  %v147_v41 = vld [vmem:[%s288_s1] ss:$0 sm:$0xff] }
  0x15   :  { %35 = vadd.xlane.f32.xlu0 %v34_v3  ;;  %41 = vadd.xlane.f32.xlu1 %v40_v4  ;;  %v37_v6 = vsel %vm33_vm0, %v30_v2, 0.0  ;;  %v43_v7 = vsel %vm33_vm0, %v32_v5, 0.0  ;;  %v148_v43 = vld [vmem:[%s289_s2] ss:$0 sm:$0xff]  ;;  %s222_s1 = smov [#allocation5]  }
  0x16   :  { %s135_s2 = sshll.u32 %s222_s1, 4  ;;  %s136_s2 = int_to_ptr.vmem [resolvable:$true] %s135_s2 }
  0x17   :  { %s193_s29 = scalar_lea.vmem %s136_s2, 256  ;;  %p198_p9 = scmp.lt.s32.totalorder %s136_s2, %s136_s2 }
  0x18   :  { %p194_p8 = scmp.ne.s32.totalorder %s136_s2, %s193_s29  ;;  %p199_p10 = scmp.lt.s32.totalorder %s193_s29, %s193_s29 }
  0x19   :  { %38 = vadd.xlane.f32.xlu0 %v37_v6  ;;  %44 = vadd.xlane.f32.xlu1 %v43_v7 }
  0x1a   :  { %p200_p11 = por %p199_p10, %p198_p9 }
  0x1c   :  { %p201_p12 = pnand %p200_p11, %p194_p8 }
  0xa2   :  { %v36_v8 = vpop.xlane.xlu0 %35  ;;  %v42_v9 = vpop.xlane.xlu1 %41 }
  0xa3   :  { %v47_v10 = vmul.f32 0.03125, %v36_v8  ;;  %v49_v11 = vmul.f32 0.03125, %v42_v9 }
  0xa5   :  { %v51_v12 = vsub.f32 %v29_v0, %v47_v10  ;;  %v53_v13 = vsub.f32 %v31_v1, %v49_v11 }
  0xa6   :  { %v39_v14 = vpop.xlane.xlu0 %38  ;;  %v45_v15 = vpop.xlane.xlu1 %44 }
  0xa7   :  { %v48_v16 = vmul.f32 0.03125, %v39_v14  ;;  %v50_v17 = vmul.f32 0.03125, %v45_v15  ;;  %v55_v18 = vmul.f32 %v51_v12, %v51_v12  ;;  %v57_v19 = vmul.f32 %v53_v13, %v53_v13 }
  0xa9   :  { %v52_v20 = vsub.f32 %v30_v2, %v48_v16  ;;  %v54_v21 = vsub.f32 %v32_v5, %v50_v17  ;;  %v59_v22 = vsel %vm33_vm0, %v55_v18, 0.0  ;;  %v65_v23 = vsel %vm33_vm0, %v57_v19, 0.0 }
  0xaa   :  { %60 = vadd.xlane.f32.xlu0 %v59_v22 }
  0xab   :  { %v56_v24 = vmul.f32 %v52_v20, %v52_v20  ;;  %v58_v25 = vmul.f32 %v54_v21, %v54_v21 }
  0xad   :  { %v62_v26 = vsel %vm33_vm0, %v56_v24, 0.0  ;;  %v68_v27 = vsel %vm33_vm0, %v58_v25, 0.0 }
  0xae   :  { %66 = vadd.xlane.f32.xlu0 %v65_v23  ;;  %63 = vadd.xlane.f32.xlu1 %v62_v26 }
  0xb2   :  { %69 = vadd.xlane.f32.xlu1 %v68_v27 }
 0x137   :  { %v61_v28 = vpop.xlane.xlu0 %60 }
 0x138   :  { %v71_v29 = vmul.f32 0.03125, %v61_v28 }
 0x13a   :  { %v75_v30 = vadd.f32 1e-12, %v71_v29 }
 0x13b   :  { %v64_v31 = vpop.xlane.xlu1 %63  ;;  %v67_v32 = vpop.xlane.xlu0 %66 }
 0x13c   :  { %163 = vrsqrt.f32 %v75_v30  ;;  %v72_v33 = vmul.f32 0.03125, %v64_v31  ;;  %v73_v34 = vmul.f32 0.03125, %v67_v32 }
 0x13e   :  { %v76_v35 = vadd.f32 1e-12, %v72_v33  ;;  %v77_v36 = vadd.f32 1e-12, %v73_v34 }
 0x13f   :  { %v70_v37 = vpop.xlane.xlu1 %69 }
 0x140   :  { %165 = vrsqrt.f32 %v76_v35  ;;  %v74_v38 = vmul.f32 0.03125, %v70_v37 }
 0x141   :  { %167 = vrsqrt.f32 %v77_v36 }
 0x142   :  { %v78_v39 = vadd.f32 1e-12, %v74_v38 }
 0x144   :  { %169 = vrsqrt.f32 %v78_v39 }
 0x146   :  { %v164_v40 = vpop.eup %163 }
 0x147   :  { %v83_v42 = vmul.f32 %v164_v40, %v51_v12 }
 0x149   :  { %v94_v44 = vmul.f32 %v147_v41, %v83_v42 }
 0x14a   :  { %v166_v45 = vpop.eup %165 }
 0x14b   :  { %v168_v46 = vpop.eup %167  ;;  %v105_v47 = vadd.f32 %v148_v43, %v94_v44  ;;  %v84_v48 = vmul.f32 %v166_v45, %v52_v20 }
 0x14c   :  { %v85_v49 = vmul.f32 %v168_v46, %v53_v13 }
 0x14d   :  { %v153_v50 = vpack.c.bf16 %v105_v47, %v105_v47  ;;  %v95_v51 = vmul.f32 %v147_v41, %v84_v48 }
 0x14e   :  { %v170_v52 = vpop.eup %169  ;;  %v96_v53 = vmul.f32 %v147_v41, %v85_v49 }
 0x14f   :  { %v106_v54 = vadd.f32 %v148_v43, %v95_v51  ;;  %v86_v55 = vmul.f32 %v170_v52, %v54_v21  ;;  %126 = vst.msk [vmem:[#allocation5] sm:$0xf] %vm125_vm1, %v153_v50 }
 0x150   :  { %v107_v56 = vadd.f32 %v148_v43, %v96_v53 }
 0x151   :  { %v154_v57 = vpack.c.bf16 %v106_v54, %v106_v54  ;;  %v97_v58 = vmul.f32 %v147_v41, %v86_v55 }
 0x152   :  { %v155_v59 = vpack.c.bf16 %v107_v56, %v107_v56 }
 0x153   :  { %v108_v60 = vadd.f32 %v148_v43, %v97_v58  ;;  %127 = vst.msk [vmem:[#allocation5 + $0x4] sm:$0xf] %vm125_vm1, %v154_v57 }
 0x154   :  { %128 = vst.msk [vmem:[#allocation5 + $0x8] sm:$0xf] %vm125_vm1, %v155_v59 }
 0x155   :  { %v156_v61 = vpack.c.bf16 %v108_v60, %v108_v60 }
 0x157   :  { %129 = vst.msk [vmem:[#allocation5 + $0xc] sm:$0xf] %vm125_vm1, %v156_v61 }
 0x158   :  { %204 = shalt.err (!%p201_p12)
}
 0x159   :  { %s205_s5 = scalar_lea.hbm %s290_s3, 256 }
 0x15a   :  { %p206_p13 = scmp.ne.s32.totalorder %s290_s3, %s205_s5  ;;  %p209_p0 = scmp.lt.u32.totalorder %s205_s5, %s290_s3 }
 0x15c   :  { %p211_p1 = pnand %p209_p0, %p206_p13 }
 0x15e   :  { %214 = shalt.err (!%p211_p1)
}
 0x15f   :  { %s223_s10 = smov 64   ;;  %s224_s11 = smov 4  }
 0x160   :  { %141 = dma.vmem_to_hbm [thread:$0]  %s136_s2, 256, %s290_s3, [#allocation4], %s223_s10, %s223_s10, %s224_s11  }
 0x161   :  { %217 = dma.done.wait [#allocation4], 256  }
 0x162   :  { %218 = vsyncadd [#allocation4], 4294967040 }
 0x163   :  { %145 = vsyncpa [#allocation3], 1 }
 0x164   :  { %146 = vsyncpa [#allocation4], 1 }

</bundles_post_ra>
